<compile_context>
chip_gen: v6e
topology: v6e:2x2x1
jax: 0.10.0
libtpu: 0.0.40
codegen_flags: <defaults>
</compile_context>

<pallas_src>
import jax
import jax.numpy as jnp
from jax import lax
from jax.experimental import pallas as pl
from jax.experimental.pallas import tpu as pltpu

EPS = 1e-4  # matches nn.BatchNorm2d(eps=1e-4) and l2normalize eps


# ----------------------------------------------------------------------------
# Tiny parameter preprocessing (plain JAX): spectral norm power iteration.
# ----------------------------------------------------------------------------
def _l2normalize(v, eps=1e-4):
    return v / (jnp.linalg.norm(v) + eps)


def _spectral_norm_weight(w, u, power_iterations=1):
    """Mirror SpectralNorm._update_u_v for a Linear weight of shape (C, K)."""
    w_mat = w.reshape(w.shape[0], -1)
    v = None
    for _ in range(power_iterations):
        v = _l2normalize(w_mat.T @ u)
        u = _l2normalize(w_mat @ v)
    sigma = u @ (w_mat @ v)
    return w / sigma
    # TODO(synk): PyTorch persists updated u/v buffers and BN running stats
    # (momentum=0.1) as module state; they do not affect this forward's output.


# ----------------------------------------------------------------------------
# Pallas kernels
# ----------------------------------------------------------------------------
def _bn_stats_kernel(x_ref, sum_ref, ssq_ref):
    """Per-row sum / sum-of-squares, accumulated over the lane (reduction) axis."""
    @pl.when(pl.program_id(1) == 0)
    def _():
        sum_ref[...] = jnp.zeros_like(sum_ref)
        ssq_ref[...] = jnp.zeros_like(ssq_ref)

    x = x_ref[...].astype(jnp.float32)            # upcast in-register; f32 accumulation
    sum_ref[...] += jnp.sum(x, axis=-1, keepdims=True)
    ssq_ref[...] += jnp.sum(x * x, axis=-1, keepdims=True)


def _affine_kernel(scale_ref, shift_ref, x_ref, o_ref):
    """Fused BN + conditional affine: out = scale * x + shift (per-row scale/shift)."""
    x = x_ref[...].astype(jnp.float32)
    o_ref[...] = (scale_ref[...] * x + shift_ref[...]).astype(o_ref.dtype)


# ----------------------------------------------------------------------------
# Tiling helpers
# ----------------------------------------------------------------------------
def _pick_tile(total, target, multiple):
    """Largest divisor of `total` that is <= target and a multiple of `multiple`;
    fall back to `total` (a full-extent block is always legal)."""
    best = None
    d = multiple
    while d <= min(total, target):
        if total % d == 0:
            best = d
        d += multiple
    return best if best is not None else total


def _tile_plan(nc_rows, hw, dtype):
    try:
        vmem_cap = pltpu.get_tpu_info().vmem_capacity_bytes
    except Exception:
        vmem_cap = 64 * 1024 * 1024
    # ~4 MiB x-tiles on 128-MiB-VMEM chips (v5e/v6e), ~2 MiB on 64-MiB v7x.
    # Either choice is well past the measured HBM-roofline knee (~512 lanes).
    tile_bytes = (4 << 20) if vmem_cap >= (100 << 20) else (2 << 20)
    tr = _pick_tile(nc_rows, 256, 8)
    lane_target = max(128, tile_bytes // (tr * jnp.dtype(dtype).itemsize))
    tl = _pick_tile(hw, lane_target, 128)
    return tr, tl


# ----------------------------------------------------------------------------
# Forward
# ----------------------------------------------------------------------------
def _cbn_forward(x_nchw, y, w_gamma, w_beta, u_gamma, u_beta):
    """x_nchw: (N, C, H, W); y: (N, K) f32; w_*: (C, K); u_*: (C,)."""
    n, c, h, w = x_nchw.shape
    nc, hw = n * c, h * w

    # Tiny matmuls (spectral-norm Linear on y) hoisted out of the hot loop.
    wg = _spectral_norm_weight(w_gamma, u_gamma).astype(jnp.float32)   # (C, K)
    wb = _spectral_norm_weight(w_beta, u_beta).astype(jnp.float32)     # (C, K)
    yf = y.astype(jnp.float32)
    gamma = yf @ wg.T + 1.0                                            # (N, C)
    beta = yf @ wb.T                                                   # (N, C)

    # Rows of x_flat are (n, c) pairs: row = n*C + c  -> full sublane packing.
    x_flat = x_nchw.reshape(nc, hw)                                    # native dtype I/O
    tr, tl = _tile_plan(nc, hw, x_flat.dtype)
    grid = (nc // tr, hw // tl)

    vmem_limit = 32 * 1024 * 1024
    cparams_stats = pltpu.CompilerParams(
        dimension_semantics=("parallel", "arbitrary"),
        vmem_limit_bytes=vmem_limit)
    cparams_norm = pltpu.CompilerParams(
        dimension_semantics=("parallel", "parallel"),
        vmem_limit_bytes=vmem_limit)

    # ---- Pass 1: per-row sum / sum-of-squares (single pass over x). ----
    row_sum, row_ssq = pl.pallas_call(
        _bn_stats_kernel,
        grid=grid,
        in_specs=[pl.BlockSpec((tr, tl), lambda r, l: (r, l))],
        out_specs=[pl.BlockSpec((tr, 1), lambda r, l: (r, 0)),
                   pl.BlockSpec((tr, 1), lambda r, l: (r, 0))],
        out_shape=[jax.ShapeDtypeStruct((nc, 1), jnp.float32),
                   jax.ShapeDtypeStruct((nc, 1), jnp.float32)],
        compiler_params=cparams_stats,
    )(x_flat)

    # ---- Finalize stats + fold BN and conditional affine (tiny, plain JAX). ----
    count = jnp.float32(n * hw)
    ch_sum = row_sum.reshape(n, c).sum(axis=0)                         # (C,)
    ch_ssq = row_ssq.reshape(n, c).sum(axis=0)                         # (C,)
    mean = ch_sum / count
    var = jnp.maximum(ch_ssq / count - mean * mean, 0.0)               # biased (training BN)
    inv_std = lax.rsqrt(var + EPS)
    scale = gamma * inv_std[None, :]                                   # (N, C)
    shift = beta - scale * mean[None, :]                               # (N, C)
    scale_rows = scale.reshape(nc, 1)
    shift_rows = shift.reshape(nc, 1)

    # ---- Pass 2: fully parallel elementwise FMA  out = scale * x + shift. ----
    # (input_output_aliases={2: 0} could alias x -> out when the activation is a
    #  donated temporary; omitted here since x is a live, non-donated input.)
    out_flat = pl.pallas_call(
        _affine_kernel,
        grid=grid,
        in_specs=[pl.BlockSpec((tr, 1), lambda r, l: (r, 0)),
                  pl.BlockSpec((tr, 1), lambda r, l: (r, 0)),
                  pl.BlockSpec((tr, tl), lambda r, l: (r, l))],
        out_specs=pl.BlockSpec((tr, tl), lambda r, l: (r, l)),
        out_shape=jax.ShapeDtypeStruct((nc, hw), x_flat.dtype),
        compiler_params=cparams_norm,
    )(scale_rows, shift_rows, x_flat)

    return out_flat.reshape(n, c, h, w)


conditional_batch_norm_2d = jax.jit(_cbn_forward)


if __name__ == "__main__":
    # Small shapes consistent with the module: batch=2, num_features=4,
    # spatial=16x16, num_classes=8.
    N, C, H, W, K = 2, 4, 16, 16, 8

    key = jax.random.PRNGKey(0)
    kx, ky, kwg, kwb, kug, kub = jax.random.split(key, 6)
    x = jax.random.normal(kx, (N, C, H, W), jnp.float32)
    y = jax.random.normal(ky, (N, K), jnp.float32)
    # nn.Linear(num_classes, num_features, bias=False) weights: (C, K)
    w_gamma = 0.1 * jax.random.normal(kwg, (C, K), jnp.float32)
    w_beta = 0.1 * jax.random.normal(kwb, (C, K), jnp.float32)
    # SpectralNorm u vectors: N(0,1) then l2-normalized (initial v is unused).
    u_gamma = _l2normalize(jax.random.normal(kug, (C,), jnp.float32))
    u_beta = _l2normalize(jax.random.normal(kub, (C,), jnp.float32))

    out = conditional_batch_norm_2d(x, y, w_gamma, w_beta, u_gamma, u_beta)
    out = jax.block_until_ready(out)

    # Pure-JAX reference check of the exact forward semantics.
    wg = _spectral_norm_weight(w_gamma, u_gamma)
    wb = _spectral_norm_weight(w_beta, u_beta)
    gamma = y @ wg.T + 1.0
    beta = y @ wb.T
    mean = x.mean(axis=(0, 2, 3), keepdims=True)
    var = ((x - mean) ** 2).mean(axis=(0, 2, 3), keepdims=True)
    ref = gamma[:, :, None, None] * ((x - mean) / jnp.sqrt(var + EPS)) \
        + beta[:, :, None, None]
    assert jnp.allclose(out, ref, atol=1e-4, rtol=1e-4), \
        float(jnp.abs(out - ref).max())

    print("KERNEL_OK")
</pallas_src>

<mosaic_0001>
module attributes {stable_mosaic.version = 11 : i64} {
  func.func @_bn_stats_kernel(%arg0: i32, %arg1: i32, %arg2: memref<8x256xf32, #tpu.memory_space<vmem>>, %arg3: memref<8x1xf32, #tpu.memory_space<vmem>>, %arg4: memref<8x1xf32, #tpu.memory_space<vmem>>) attributes {dimension_semantics = [#tpu.dimension_semantics<parallel>, #tpu.dimension_semantics<arbitrary>], iteration_bounds = array<i64: 1, 1>, scalar_prefetch = 0 : i64, scratch_operands = 0 : i64, tpu.core_type = #tpu.core_type<tc>, window_params = [{transform_indices = @transform_0, window_bounds = array<i64: 8, 256>}, {transform_indices = @transform_1, window_bounds = array<i64: 8, 1>}, {transform_indices = @transform_2, window_bounds = array<i64: 8, 1>}]} {
    %c0_i32 = arith.constant 0 : i32
    %0 = arith.cmpi eq, %arg1, %c0_i32 : i32
    %1 = arith.extui %0 : i1 to i32
    %c0_i32_0 = arith.constant 0 : i32
    %2 = arith.cmpi ne, %1, %c0_i32_0 : i32
    scf.if %2 {
      %cst_11 = arith.constant 0.000000e+00 : f32
      %15 = vector.broadcast %cst_11 : f32 to vector<8x1xf32>
      %c0_12 = arith.constant 0 : index
      %c0_13 = arith.constant 0 : index
      %16 = vector.load %arg3[%c0_12, %c0_13] : memref<8x1xf32, #tpu.memory_space<vmem>>, vector<8x1xf32>
      tpu.vector_store %arg3[%c0_12, %c0_13], %15 {strides = array<i32>} : memref<8x1xf32, #tpu.memory_space<vmem>>, vector<8x1xf32>,
      %cst_14 = arith.constant 0.000000e+00 : f32
      %17 = vector.broadcast %cst_14 : f32 to vector<8x1xf32>
      %c0_15 = arith.constant 0 : index
      %c0_16 = arith.constant 0 : index
      %18 = vector.load %arg4[%c0_15, %c0_16] : memref<8x1xf32, #tpu.memory_space<vmem>>, vector<8x1xf32>
      tpu.vector_store %arg4[%c0_15, %c0_16], %17 {strides = array<i32>} : memref<8x1xf32, #tpu.memory_space<vmem>>, vector<8x1xf32>,
    } else {
    }
    %c0 = arith.constant 0 : index
    %c0_1 = arith.constant 0 : index
    %3 = vector.load %arg2[%c0, %c0_1] : memref<8x256xf32, #tpu.memory_space<vmem>>, vector<8x256xf32>
    %c0_2 = arith.constant 0 : index
    %c0_3 = arith.constant 0 : index
    %4 = vector.load %arg3[%c0_2, %c0_3] : memref<8x1xf32, #tpu.memory_space<vmem>>, vector<8x1xf32>
    %cst = arith.constant dense<0.000000e+00> : vector<8xf32>
    %5 = vector.multi_reduction <add>, %3, %cst [1] : vector<8x256xf32> to vector<8xf32>
    %6 = vector.shape_cast %5 : vector<8xf32> to vector<8x1xf32>
    %7 = arith.addf %4, %6 : vector<8x1xf32>
    %c0_4 = arith.constant 0 : index
    %c0_5 = arith.constant 0 : index
    %8 = vector.load %arg3[%c0_4, %c0_5] : memref<8x1xf32, #tpu.memory_space<vmem>>, vector<8x1xf32>
    tpu.vector_store %arg3[%c0_4, %c0_5], %7 {strides = array<i32>} : memref<8x1xf32, #tpu.memory_space<vmem>>, vector<8x1xf32>,
    %c0_6 = arith.constant 0 : index
    %c0_7 = arith.constant 0 : index
    %9 = vector.load %arg4[%c0_6, %c0_7] : memref<8x1xf32, #tpu.memory_space<vmem>>, vector<8x1xf32>
    %10 = arith.mulf %3, %3 : vector<8x256xf32>
    %cst_8 = arith.constant dense<0.000000e+00> : vector<8xf32>
    %11 = vector.multi_reduction <add>, %10, %cst_8 [1] : vector<8x256xf32> to vector<8xf32>
    %12 = vector.shape_cast %11 : vector<8xf32> to vector<8x1xf32>
    %13 = arith.addf %9, %12 : vector<8x1xf32>
    %c0_9 = arith.constant 0 : index
    %c0_10 = arith.constant 0 : index
    %14 = vector.load %arg4[%c0_9, %c0_10] : memref<8x1xf32, #tpu.memory_space<vmem>>, vector<8x1xf32>
    tpu.vector_store %arg4[%c0_9, %c0_10], %13 {strides = array<i32>} : memref<8x1xf32, #tpu.memory_space<vmem>>, vector<8x1xf32>,
    return
  }
  func.func @transform_0(%arg0: i32, %arg1: i32) -> (i32, i32) {
    %c0_i32 = arith.constant 0 : i32
    return %arg0, %arg1 : i32, i32
  }
  func.func @transform_1(%arg0: i32, %arg1: i32) -> (i32, i32) {
    %c0_i32 = arith.constant 0 : i32
    %c0_i32_0 = arith.constant 0 : i32
    return %arg0, %c0_i32 : i32, i32
  }
  func.func @transform_2(%arg0: i32, %arg1: i32) -> (i32, i32) {
    %c0_i32 = arith.constant 0 : i32
    %c0_i32_0 = arith.constant 0 : i32
    return %arg0, %c0_i32 : i32, i32
  }
}

module attributes {stable_mosaic.version = 11 : i64} {
  func.func @_affine_kernel(%arg0: i32, %arg1: i32, %arg2: memref<8x1xf32, #tpu.memory_space<vmem>>, %arg3: memref<8x1xf32, #tpu.memory_space<vmem>>, %arg4: memref<8x256xf32, #tpu.memory_space<vmem>>, %arg5: memref<8x256xf32, #tpu.memory_space<vmem>>) attributes {dimension_semantics = [#tpu.dimension_semantics<parallel>, #tpu.dimension_semantics<parallel>], iteration_bounds = array<i64: 1, 1>, scalar_prefetch = 0 : i64, scratch_operands = 0 : i64, tpu.core_type = #tpu.core_type<tc>, window_params = [{transform_indices = @transform_0, window_bounds = array<i64: 8, 1>}, {transform_indices = @transform_1, window_bounds = array<i64: 8, 1>}, {transform_indices = @transform_2, window_bounds = array<i64: 8, 256>}, {transform_indices = @transform_3, window_bounds = array<i64: 8, 256>}]} {
    %c0 = arith.constant 0 : index
    %c0_0 = arith.constant 0 : index
    %0 = vector.load %arg4[%c0, %c0_0] : memref<8x256xf32, #tpu.memory_space<vmem>>, vector<8x256xf32>
    %c0_1 = arith.constant 0 : index
    %c0_2 = arith.constant 0 : index
    %1 = vector.load %arg2[%c0_1, %c0_2] : memref<8x1xf32, #tpu.memory_space<vmem>>, vector<8x1xf32>
    %2 = vector.broadcast %1 : vector<8x1xf32> to vector<8x256xf32>
    %3 = arith.mulf %2, %0 : vector<8x256xf32>
    %c0_3 = arith.constant 0 : index
    %c0_4 = arith.constant 0 : index
    %4 = vector.load %arg3[%c0_3, %c0_4] : memref<8x1xf32, #tpu.memory_space<vmem>>, vector<8x1xf32>
    %5 = vector.broadcast %4 : vector<8x1xf32> to vector<8x256xf32>
    %6 = arith.addf %3, %5 : vector<8x256xf32>
    %c0_5 = arith.constant 0 : index
    %c0_6 = arith.constant 0 : index
    %7 = vector.load %arg5[%c0_5, %c0_6] : memref<8x256xf32, #tpu.memory_space<vmem>>, vector<8x256xf32>
    tpu.vector_store %arg5[%c0_5, %c0_6], %6 {strides = array<i32>} : memref<8x256xf32, #tpu.memory_space<vmem>>, vector<8x256xf32>,
    return
  }
  func.func @transform_0(%arg0: i32, %arg1: i32) -> (i32, i32) {
    %c0_i32 = arith.constant 0 : i32
    %c0_i32_0 = arith.constant 0 : i32
    return %arg0, %c0_i32 : i32, i32
  }
  func.func @transform_1(%arg0: i32, %arg1: i32) -> (i32, i32) {
    %c0_i32 = arith.constant 0 : i32
    %c0_i32_0 = arith.constant 0 : i32
    return %arg0, %c0_i32 : i32, i32
  }
  func.func @transform_2(%arg0: i32, %arg1: i32) -> (i32, i32) {
    %c0_i32 = arith.constant 0 : i32
    return %arg0, %arg1 : i32, i32
  }
  func.func @transform_3(%arg0: i32, %arg1: i32) -> (i32, i32) {
    %c0_i32 = arith.constant 0 : i32
    return %arg0, %arg1 : i32, i32
  }
}

</mosaic_0001>

<bundles_post_ra>
// kernel: _cbn_forward.2
= control target key start
LH: loop header
LB: loop body
LE: loop exit
PB: predicated region body
PF: predicated region fallthrough
CT: control target
= control target key end

     0   :  { %vm14_vm0 = vcmask 7168   ;;  %v43_v2 = vmov 0.0   ;;  %s87_s0 = inlined_call_operand.vmem [shape: f32[8,256], index: 0, kind: input, shape index: {}]   ;;  %s88_s1 = inlined_call_operand.vmem [shape: f32[8,1], index: 1, kind: output, shape index: {0}]   ;;  %s89_s2 = inlined_call_operand.vmem [shape: f32[8,1], index: 2, kind: output, shape index: {1}]  }
   0x1   :  { %v17_v0 = vld [vmem:[%s87_s0] sm:$0xff]  ;;  %v18_v1 = vld [vmem:[%s87_s0 + $0x8] sm:$0xff]  ;;  %15 = vst.msk [vmem:[%s88_s1] sm:$0xff] %vm14_vm0, %v43_v2  ;;  %16 = vst.msk [vmem:[%s89_s2] sm:$0xff] %vm14_vm0, %v43_v2 }
   0x2   :  { %v20_v3 = vadd.f32 %v18_v1, %v17_v0  ;;  %v27_v4 = vmul.f32 %v17_v0, %v17_v0  ;;  %v28_v5 = vmul.f32 %v18_v1, %v18_v1 }
   0x4   :  { %21 = vadd.xlane.f32.xlu0 %v20_v3  ;;  %v29_v6 = vadd.f32 %v28_v5, %v27_v4 }
   0x8   :  { %30 = vadd.xlane.f32.xlu0 %v29_v6  ;;  %v19_v7 = vld [vmem:[%s88_s1] sm:$0xff] }
   0x9   :  { %v26_v10 = vld [vmem:[%s89_s2] sm:$0xff] }
  0x8d   :  { %v22_v8 = vpop.xlane.xlu0 %21 }
  0x8e   :  { %v23_v9 = vadd.f32 %v22_v8, %v19_v7 }
  0x90   :  { %25 = vst.msk [vmem:[%s88_s1] sm:$0xff] %vm14_vm0, %v23_v9 }
  0x91   :  { %v31_v11 = vpop.xlane.xlu0 %30 }
  0x92   :  { %v32_v12 = vadd.f32 %v31_v11, %v26_v10 }
  0x94   :  { %33 = vst.msk [vmem:[%s89_s2] sm:$0xff] %vm14_vm0, %v32_v12 }

// kernel: _cbn_forward.3
= control target key start
LH: loop header
LB: loop body
LE: loop exit
PB: predicated region body
PF: predicated region fallthrough
CT: control target
= control target key end

     0   :  { %v40_v0 = vmov 0   ;;  %s79_s0 = inlined_call_operand.vmem [shape: f32[8,1], index: 0, kind: input, shape index: {}]   ;;  %s80_s1 = inlined_call_operand.vmem [shape: f32[8,1], index: 1, kind: input, shape index: {}]   ;;  %s81_s2 = inlined_call_operand.vmem [shape: f32[8,256], index: 2, kind: input, shape index: {}]   ;;  %s82_s3 = inlined_call_operand.vmem [shape: f32[8,256], index: 3, kind: output, shape index: {}]  }
   0x1   :  { %39 = vset.pattern.permute.xlu0 %v40_v0  ;;  %v16_v1 = vld [vmem:[%s79_s0] sm:$0xff]  ;;  %v15_v4 = vld [vmem:[%s81_s2 + $0x8] sm:$0xff] }
   0x2   :  { %19 = vperm.xlu0 %39, %v16_v1   ;;  %v24_v2 = vld [vmem:[%s80_s1] sm:$0xff] }
   0x3   :  { %v14_v3 = vld [vmem:[%s81_s2] sm:$0xff] }
   0x6   :  { %27 = vperm.xlu0 %39, %v24_v2  }
  0x7d   :  { %v20_v5 = vpop.permute.xlu0 %19 }
  0x7e   :  { %v22_v6 = vmul.f32 %v20_v5, %v14_v3  ;;  %v23_v7 = vmul.f32 %v20_v5, %v15_v4 }
  0x81   :  { %v28_v8 = vpop.permute.xlu0 %27 }
  0x82   :  { %v30_v9 = vadd.f32 %v28_v8, %v22_v6  ;;  %v31_v10 = vadd.f32 %v28_v8, %v23_v7 }
  0x84   :  { %32 = vst [vmem:[%s82_s3] sm:$0xff] %v30_v9  ;;  %33 = vst [vmem:[%s82_s3 + $0x8] sm:$0xff] %v31_v10 }

</bundles_post_ra>
